<compile_context>
chip_gen: v7x
topology: tpu7x:2x2x1
jax: 0.10.0
libtpu: 0.0.40
codegen_flags: <defaults>
</compile_context>

<pallas_src>
import jax
import jax.numpy as jnp
from jax.experimental import pallas as pl
from jax.experimental.pallas import tpu as pltpu

# small, forward-consistent hyperparameters (module uses n_embd=384/block=256;
# same structure at reduced size)
N_EMBD = 32
NUM_HEADS = 4
HEAD_SIZE = N_EMBD // NUM_HEADS
BATCH = 2
SEQ = 8          # T <= block_size; causal mask built in-kernel from iota


def _mha_fused_kernel(x_ref, wqkv_ref, wproj_ref, bproj_ref, o_ref):
    # x_ref    : (1, T, C)        one batch element, bf16
    # wqkv_ref : (3H, C, hs)      [q-heads | k-heads | v-heads] stacked on dim 0, bf16
    # wproj_ref: (H, hs, C)       output projection weight, head-major rows, bf16
    # bproj_ref: (1, C)           output projection bias, bf16
    # o_ref    : (1, T, C)        bf16
    x = x_ref[0]                                   # (T, C) bf16
    T, C = x.shape
    H, hs, _ = wproj_ref.shape
    G = wqkv_ref.shape[0]                          # 3*H

    # One batched MXU einsum produces Q/K/V for every head directly in the
    # (head, T, hs) layout -> no lane slicing, no transpose, no concat later.
    xg = jnp.broadcast_to(x, (G, T, C))            # leading-dim broadcast (cheap)
    qkv = jnp.einsum('gtc,gcd->gtd', xg, wqkv_ref[...],
                     preferred_element_type=jnp.float32)       # (3H, T, hs) f32

    # scale by n_embd (C), exactly as the reference module (NOT hs**-0.5);
    # folded into q once instead of scaling every per-head (T,T) score matrix.
    scale = float(C) ** -0.5
    q = qkv[0:H] * scale                           # (H, T, hs)  leading-dim slices
    k = qkv[H:2 * H]
    v = qkv[2 * H:3 * H]

    row = jax.lax.broadcasted_iota(jnp.int32, (T, T), 0)
    col = jax.lax.broadcasted_iota(jnp.int32, (T, T), 1)
    causal = col <= row                            # (T, T), broadcasts over heads

    # head-batched attention
    s = jnp.einsum('htd,hsd->hts', q, k,
                   preferred_element_type=jnp.float32)         # (H, T, T)
    s = jnp.where(causal, s, -1e30)                # finite mask value; exp -> 0
    s = s - jnp.max(s, axis=-1, keepdims=True)
    p = jnp.exp(s)
    p = p * pl.reciprocal(jnp.sum(p, axis=-1, keepdims=True), approx=True)  # EUP
    # attention dropout -> identity (inference)
    att = jnp.einsum('hts,hsd->htd', p, v,
                     preferred_element_type=jnp.float32)       # (H, T, hs)

    # Fused output projection: per-head partial products summed over heads.
    # Identical to concat(heads) @ W_proj, but needs no concat / lane relayout.
    yh = jnp.einsum('htd,hdc->htc', att.astype(wproj_ref.dtype), wproj_ref[...],
                    preferred_element_type=jnp.float32)        # (H, T, C)
    y = jnp.sum(yh, axis=0) + bproj_ref[...].astype(jnp.float32)   # (T, C)
    # output dropout -> identity (inference)
    o_ref[0] = y.astype(o_ref.dtype)


def prepare_mha_params(wq, wk, wv, w_proj, b_proj, dtype=jnp.bfloat16):
    """One-time (init) parameter packing - hoisted out of the forward path.

    wq/wk/wv : (H, C, hs) pre-transposed per-head projection weights
    w_proj   : (C, C) pre-transposed output projection (y = att @ w_proj)
    b_proj   : (C,) or (1, C) bias
    """
    H, C, hs = wq.shape
    w_qkv = jnp.concatenate([wq, wk, wv], axis=0).astype(dtype)     # (3H, C, hs)
    w_proj_h = w_proj.reshape(H, hs, C).astype(dtype)               # (H, hs, C)
    b = b_proj.reshape(1, C).astype(dtype)                          # (1, C)
    return w_qkv, w_proj_h, b


def multi_head_attention(x, w_qkv, w_proj_h, b_proj):
    """x: (B, T, C) bf16; params as produced by prepare_mha_params."""
    B, T, C = x.shape
    G = w_qkv.shape[0]
    H, hs, _ = w_proj_h.shape
    assert G == 3 * H and H * hs == C

    return pl.pallas_call(
        _mha_fused_kernel,
        out_shape=jax.ShapeDtypeStruct((B, T, C), x.dtype),
        grid=(B,),   # B=2 -> 2-way parallel extent (maps onto v7x's 2 TCs)
        in_specs=[
            pl.BlockSpec((1, T, C), lambda b: (b, 0, 0)),
            # weights: full-array blocks, constant index_map -> VMEM resident
            # across grid steps (no per-step re-DMA, no per-step casts)
            pl.BlockSpec((G, C, hs), lambda b: (0, 0, 0)),
            pl.BlockSpec((H, hs, C), lambda b: (0, 0, 0)),
            pl.BlockSpec((1, C), lambda b: (0, 0)),
        ],
        out_specs=pl.BlockSpec((1, T, C), lambda b: (b, 0, 0)),
        compiler_params=pltpu.CompilerParams(
            dimension_semantics=("parallel",)),
    )(x, w_qkv, w_proj_h, b_proj)


def _reference(x, wq, wk, wv, w_proj, b_proj):
    """Pure-JAX f32 reference mirroring the PyTorch forward (eval mode)."""
    B, T, C = x.shape
    mask = jnp.tril(jnp.ones((T, T), dtype=bool))
    outs = []
    for h in range(wq.shape[0]):
        q = x @ wq[h]
        k = x @ wk[h]
        v = x @ wv[h]
        wei = (q @ jnp.swapaxes(k, -2, -1)) * C ** (-0.5)
        wei = jnp.where(mask, wei, -jnp.inf)
        wei = jax.nn.softmax(wei, axis=-1)
        outs.append(wei @ v)
    cat = jnp.concatenate(outs, axis=-1)
    return cat @ w_proj + b_proj


if __name__ == "__main__":
    key = jax.random.PRNGKey(0)
    kx, kq, kk, kv, kp, kb = jax.random.split(key, 6)

    # f32 master values, then a bf16 "checkpoint" (what the kernel consumes)
    bound = N_EMBD ** -0.5
    x_f = jax.random.normal(kx, (BATCH, SEQ, N_EMBD), dtype=jnp.float32)
    wq_f = jax.random.uniform(kq, (NUM_HEADS, N_EMBD, HEAD_SIZE), jnp.float32, -bound, bound)
    wk_f = jax.random.uniform(kk, (NUM_HEADS, N_EMBD, HEAD_SIZE), jnp.float32, -bound, bound)
    wv_f = jax.random.uniform(kv, (NUM_HEADS, N_EMBD, HEAD_SIZE), jnp.float32, -bound, bound)
    wp_f = jax.random.uniform(kp, (N_EMBD, N_EMBD), jnp.float32, -bound, bound)
    bp_f = jax.random.uniform(kb, (N_EMBD,), jnp.float32, -bound, bound)

    x = x_f.astype(jnp.bfloat16)
    wq = wq_f.astype(jnp.bfloat16)
    wk = wk_f.astype(jnp.bfloat16)
    wv = wv_f.astype(jnp.bfloat16)
    wp = wp_f.astype(jnp.bfloat16)
    bp = bp_f.astype(jnp.bfloat16)

    # init-time parameter packing (hoisted out of the forward call)
    w_qkv, w_proj_h, b_proj = prepare_mha_params(wq, wk, wv, wp, bp)

    out = multi_head_attention(x, w_qkv, w_proj_h, b_proj)
    out = jax.block_until_ready(out)
    assert out.shape == (BATCH, SEQ, N_EMBD)

    # Reference in f32 arithmetic from the SAME bf16-rounded inputs, so the
    # comparison isolates the kernel's own error: approx reciprocal (~1e-4),
    # bf16 round of `att` before the projection, and the bf16 output store
    # (~2e-3 combined).  1e-2 gives a few-x margin over that actual error.
    f32 = jnp.float32
    ref = _reference(x.astype(f32), wq.astype(f32), wk.astype(f32),
                     wv.astype(f32), wp.astype(f32), bp.astype(f32).reshape(1, N_EMBD))
    out_f = out.astype(f32)
    max_err = float(jnp.max(jnp.abs(out_f - ref)))
    assert jnp.allclose(out_f, ref, atol=1e-2, rtol=1e-2), f"mismatch vs reference (max abs err {max_err})"

    print("KERNEL_OK")
</pallas_src>

<mosaic_0001>
module attributes {stable_mosaic.version = 11 : i64} {
  func.func @_mha_fused_kernel(%arg0: i32, %arg1: memref<1x8x32xbf16, #tpu.memory_space<vmem>>, %arg2: memref<12x32x8xbf16, #tpu.memory_space<vmem>>, %arg3: memref<4x8x32xbf16, #tpu.memory_space<vmem>>, %arg4: memref<1x32xbf16, #tpu.memory_space<vmem>>, %arg5: memref<1x8x32xbf16, #tpu.memory_space<vmem>>) attributes {dimension_semantics = [#tpu.dimension_semantics<parallel>], iteration_bounds = array<i64: 2>, scalar_prefetch = 0 : i64, scratch_operands = 0 : i64, tpu.core_type = #tpu.core_type<tc>, window_params = [{transform_indices = @transform_0, window_bounds = array<i64: 1, 8, 32>}, {pipeline_mode = #tpu.pipeline_mode<synchronous>, transform_indices = @transform_1, window_bounds = array<i64: 12, 32, 8>}, {pipeline_mode = #tpu.pipeline_mode<synchronous>, transform_indices = @transform_2, window_bounds = array<i64: 4, 8, 32>}, {pipeline_mode = #tpu.pipeline_mode<synchronous>, transform_indices = @transform_3, window_bounds = array<i64: 1, 32>}, {transform_indices = @transform_4, window_bounds = array<i64: 1, 8, 32>}]} {
    %c0 = arith.constant 0 : index
    %c0_0 = arith.constant 0 : index
    %c0_1 = arith.constant 0 : index
    %0 = vector.load %arg1[%c0, %c0_0, %c0_1] : memref<1x8x32xbf16, #tpu.memory_space<vmem>>, vector<1x8x32xbf16>
    %1 = vector.shape_cast %0 : vector<1x8x32xbf16> to vector<8x32xbf16>
    %2 = vector.shape_cast %1 : vector<8x32xbf16> to vector<1x8x32xbf16>
    %3 = vector.broadcast %2 : vector<1x8x32xbf16> to vector<12x8x32xbf16>
    %c0_2 = arith.constant 0 : index
    %c0_3 = arith.constant 0 : index
    %c0_4 = arith.constant 0 : index
    %4 = vector.load %arg2[%c0_2, %c0_3, %c0_4] : memref<12x32x8xbf16, #tpu.memory_space<vmem>>, vector<12x32x8xbf16>
    "tpu.trace_start"() <{level = 10 : i32, message = "gtc,gcd->gtd"}> : () -> ()
    %cst = arith.constant dense<0.000000e+00> : vector<12x8x8xf32>
    %5 = tpu.matmul %3, %4, %cst {dimension_numbers = #tpu.dot_dimension_numbers<[2], [1], [1], [2], [0, 0, 0, 1, 1, 2], [0], [0]>} : vector<12x8x32xbf16>, vector<12x32x8xbf16>, vector<12x8x8xf32> -> vector<12x8x8xf32>
    "tpu.trace_stop"() : () -> ()
    %6 = vector.extract_strided_slice %5 {offsets = [0, 0, 0], sizes = [4, 8, 8], strides = [1, 1, 1]} : vector<12x8x8xf32> to vector<4x8x8xf32>
    %cst_5 = arith.constant 0.176776692 : f32
    %7 = vector.broadcast %cst_5 : f32 to vector<4x8x8xf32>
    %8 = arith.mulf %6, %7 : vector<4x8x8xf32>
    %9 = vector.extract_strided_slice %5 {offsets = [4, 0, 0], sizes = [4, 8, 8], strides = [1, 1, 1]} : vector<12x8x8xf32> to vector<4x8x8xf32>
    %10 = vector.extract_strided_slice %5 {offsets = [8, 0, 0], sizes = [4, 8, 8], strides = [1, 1, 1]} : vector<12x8x8xf32> to vector<4x8x8xf32>
    %11 = tpu.iota {dimensions = array<i32: 0>} : vector<8x8xi32>
    %12 = tpu.iota {dimensions = array<i32: 1>} : vector<8x8xi32>
    %13 = arith.cmpi sle, %12, %11 : vector<8x8xi32>
    "tpu.trace_start"() <{level = 10 : i32, message = "htd,hsd->hts"}> : () -> ()
    %cst_6 = arith.constant dense<0.000000e+00> : vector<4x8x8xf32>
    %14 = tpu.matmul %8, %9, %cst_6 {dimension_numbers = #tpu.dot_dimension_numbers<[2], [2], [1], [1], [0, 0, 0, 1, 1, 1], [0], [0]>} : vector<4x8x8xf32>, vector<4x8x8xf32>, vector<4x8x8xf32> -> vector<4x8x8xf32>
    %cst_7 = arith.constant -1.000000e+30 : f32
    "tpu.trace_stop"() : () -> ()
    %15 = vector.shape_cast %13 : vector<8x8xi1> to vector<1x8x8xi1>
    %16 = vector.broadcast %15 : vector<1x8x8xi1> to vector<4x8x8xi1>
    %17 = vector.broadcast %cst_7 : f32 to vector<4x8x8xf32>
    %18 = arith.select %16, %14, %17 : vector<4x8x8xi1>, vector<4x8x8xf32>
    %cst_8 = arith.constant dense<0xFF800000> : vector<4x8xf32>
    %19 = vector.multi_reduction <maximumf>, %18, %cst_8 [2] : vector<4x8x8xf32> to vector<4x8xf32>
    %20 = vector.shape_cast %19 : vector<4x8xf32> to vector<4x8x1xf32>
    %21 = vector.broadcast %20 : vector<4x8x1xf32> to vector<4x8x8xf32>
    %22 = arith.subf %18, %21 : vector<4x8x8xf32>
    %23 = math.exp %22 : vector<4x8x8xf32>
    %cst_9 = arith.constant dense<0.000000e+00> : vector<4x8xf32>
    %24 = vector.multi_reduction <add>, %23, %cst_9 [2] : vector<4x8x8xf32> to vector<4x8xf32>
    %25 = vector.shape_cast %24 : vector<4x8xf32> to vector<4x8x1xf32>
    %26 = tpu.reciprocal %25 {approx = true} : vector<4x8x1xf32> -> vector<4x8x1xf32>
    %27 = vector.broadcast %26 : vector<4x8x1xf32> to vector<4x8x8xf32>
    %28 = arith.mulf %23, %27 : vector<4x8x8xf32>
    "tpu.trace_start"() <{level = 10 : i32, message = "hts,hsd->htd"}> : () -> ()
    %cst_10 = arith.constant dense<0.000000e+00> : vector<4x8x8xf32>
    %29 = tpu.matmul %28, %10, %cst_10 {dimension_numbers = #tpu.dot_dimension_numbers<[2], [1], [1], [2], [0, 0, 0, 1, 1, 2], [0], [0]>} : vector<4x8x8xf32>, vector<4x8x8xf32>, vector<4x8x8xf32> -> vector<4x8x8xf32>
    "tpu.trace_stop"() : () -> ()
    %30 = arith.truncf %29 : vector<4x8x8xf32> to vector<4x8x8xbf16>
    %c0_11 = arith.constant 0 : index
    %c0_12 = arith.constant 0 : index
    %c0_13 = arith.constant 0 : index
    %31 = vector.load %arg3[%c0_11, %c0_12, %c0_13] : memref<4x8x32xbf16, #tpu.memory_space<vmem>>, vector<4x8x32xbf16>
    "tpu.trace_start"() <{level = 10 : i32, message = "htd,hdc->htc"}> : () -> ()
    %cst_14 = arith.constant dense<0.000000e+00> : vector<4x8x32xf32>
    %32 = tpu.matmul %30, %31, %cst_14 {dimension_numbers = #tpu.dot_dimension_numbers<[2], [1], [1], [2], [0, 0, 0, 1, 1, 2], [0], [0]>} : vector<4x8x8xbf16>, vector<4x8x32xbf16>, vector<4x8x32xf32> -> vector<4x8x32xf32>
    "tpu.trace_stop"() : () -> ()
    %cst_15 = arith.constant dense<0.000000e+00> : vector<8x32xf32>
    %33 = vector.multi_reduction <add>, %32, %cst_15 [0] : vector<4x8x32xf32> to vector<8x32xf32>
    %c0_16 = arith.constant 0 : index
    %c0_17 = arith.constant 0 : index
    %34 = vector.load %arg4[%c0_16, %c0_17] : memref<1x32xbf16, #tpu.memory_space<vmem>>, vector<1x32xbf16>
    %35 = arith.extf %34 : vector<1x32xbf16> to vector<1x32xf32>
    %36 = vector.broadcast %35 : vector<1x32xf32> to vector<8x32xf32>
    %37 = arith.addf %33, %36 : vector<8x32xf32>
    %38 = arith.truncf %37 : vector<8x32xf32> to vector<8x32xbf16>
    %c0_18 = arith.constant 0 : index
    %c0_19 = arith.constant 0 : index
    %c0_20 = arith.constant 0 : index
    %39 = vector.load %arg5[%c0_18, %c0_19, %c0_20] : memref<1x8x32xbf16, #tpu.memory_space<vmem>>, vector<1x8x32xbf16>
    %40 = vector.shape_cast %39 : vector<1x8x32xbf16> to vector<8x32xbf16>
    %41 = vector.shape_cast %38 : vector<8x32xbf16> to vector<1x8x32xbf16>
    tpu.vector_store %arg5[%c0_18, %c0_19, %c0_20], %41 {strides = array<i32>} : memref<1x8x32xbf16, #tpu.memory_space<vmem>>, vector<1x8x32xbf16>,
    return
  }
  func.func @transform_0(%arg0: i32) -> (i32, i32, i32) {
    %c0_i32 = arith.constant 0 : i32
    %c0_i32_0 = arith.constant 0 : i32
    %c0_i32_1 = arith.constant 0 : i32
    return %arg0, %c0_i32, %c0_i32_0 : i32, i32, i32
  }
  func.func @transform_1(%arg0: i32) -> (i32, i32, i32) {
    %c0_i32 = arith.constant 0 : i32
    %c0_i32_0 = arith.constant 0 : i32
    %c0_i32_1 = arith.constant 0 : i32
    %c0_i32_2 = arith.constant 0 : i32
    return %c0_i32, %c0_i32_0, %c0_i32_1 : i32, i32, i32
  }
  func.func @transform_2(%arg0: i32) -> (i32, i32, i32) {
    %c0_i32 = arith.constant 0 : i32
    %c0_i32_0 = arith.constant 0 : i32
    %c0_i32_1 = arith.constant 0 : i32
    %c0_i32_2 = arith.constant 0 : i32
    return %c0_i32, %c0_i32_0, %c0_i32_1 : i32, i32, i32
  }
  func.func @transform_3(%arg0: i32) -> (i32, i32) {
    %c0_i32 = arith.constant 0 : i32
    %c0_i32_0 = arith.constant 0 : i32
    %c0_i32_1 = arith.constant 0 : i32
    return %c0_i32, %c0_i32_0 : i32, i32
  }
  func.func @transform_4(%arg0: i32) -> (i32, i32, i32) {
    %c0_i32 = arith.constant 0 : i32
    %c0_i32_0 = arith.constant 0 : i32
    %c0_i32_1 = arith.constant 0 : i32
    return %arg0, %c0_i32, %c0_i32_0 : i32, i32, i32
  }
}

</mosaic_0001>

<bundles_post_ra>
// kernel: tpu_custom_call.1
= control target key start
LH: loop header
LB: loop body
LE: loop exit
PB: predicated region body
PF: predicated region fallthrough
CT: control target
= control target key end

     0   :  { %9 = vsyncpa [#allocation3], 0  ;;  %s2612_s0 = inlined_call_operand.vmem [shape: bf16[2,8,32], index: 0, kind: input, shape index: {}]   ;;  %s2613_s1 = inlined_call_operand.vmem [shape: bf16[12,32,8], index: 1, kind: input, shape index: {}]   ;;  %s2614_s2 = inlined_call_operand.vmem [shape: bf16[4,8,32], index: 2, kind: input, shape index: {}]   ;;  %s2615_s3 = inlined_call_operand.vmem [shape: bf16[1,32], index: 3, kind: input, shape index: {}]   ;;  %s2616_s4 = inlined_call_operand.hbm [shape: bf16[2,8,32], index: 4, kind: output, shape index: {}]  }
   0x1   :  { %11 = vsyncpa [#allocation3 + $0x1], 0  ;;  %s2265_s15 = smov 0   ;;  %s2267_s16 = smov 0  }
   0x2   :  { %s2269_s17 = smov 0   ;;  %s2271_s18 = smov 0  }
   0x3 LB: > { %s2286_s19 = sadd.s32 4294967295, %s2235_s18   ;;  %s1810_s20 = sadd.s32 4294967294, %s2235_s18   ;;  %s2235_s18 = sphi %s2271_s18, %s2622_s18   ;;  %s2231_s17 = sphi %s2269_s17, %s2621_s17   ;;  %s2227_s16 = sphi %s2267_s16, %s2620_s16   ;;  %s2223_s15 = sphi %s2265_s15, %s2619_s15  }
   0x4   : > { %s2290_s21 = sadd.s32 1, %s2235_s18   ;;  %s113_s22 = sadd.s32 1, %s2231_s17 }
   0x5   : > { %s110_s23 = ssub.s32 %s2235_s18, %s2290_s21  ;;  %p123_p0 = scmp.ne.s32.totalorder %s2231_s17, %s2227_s16 }
   0x6   : > { %p111_p1 = scmp.eq.s32.totalorder %s110_s23, 0  ;;  %p124_p2 = scmp.eq.s32.totalorder %s2286_s19, 1 }
   0x7   : > { %p129_p3 = scmp.ne.s32.totalorder %s2227_s16, %s2223_s15  ;;  %p130_p4 = scmp.eq.s32.totalorder %s1810_s20, 1 }
   0x8   : > { %s2301_s24 = scalar_select %p111_p1, %s2231_s17, %s113_s22  }
   0x9   : > { %p2303_p5 = por %p124_p2, %p123_p0  ;;  %p2307_p6 = por %p130_p4, %p129_p3 }
   0xa   : > { %p1813_p7 = scmp.ge.s32.totalorder %s2235_s18, 1  ;;  %p164_p8 = scmp.lt.s32.totalorder %s2235_s18, 3 }
   0xc   : > { %p165_p9 = pnand %p1813_p7, %p164_p8 }
   0xd   : > { %v2133_v0 = vld [vmem:[%s2613_s1] sm:$0xff] (!%p165_p9)   ;;  %v2237_v1 = vmov (!%p165_p9), 0.0   ;;  %v2134_v2 = vld [vmem:[%s2613_s1 + $0x10] sm:$0xff] (!%p165_p9)   ;;  %v2135_v3 = vld [vmem:[%s2613_s1 + $0x8] sm:$0xff] (!%p165_p9)   ;;  %vm2238_vm0 = vmmov (!%p165_p9), 0   ;;  %p189_p10 = scmp.lt.s32.totalorder (!%p165_p9), %s2286_s19, 1 }
   0xe   : > { %168 = sbr.rel (%p165_p9) target bundleno = 1243 (0x4db), region = 36  ;;  %1932 = vmatprep.subr.bf16.mxu0 (!%p165_p9), %v2237_v1  ;;  %1940 = vmatprep.subr.bf16.mxu1 (!%p165_p9), %v2237_v1  ;;  %v2136_v4 = vld [vmem:[%s2613_s1 + $0x18] sm:$0xff] (!%p165_p9)   ;;  %vm255_vm1 = vcmask (!%p165_p9), 261120   ;;  %v2137_v5 = vld [vmem:[%s2613_s1 + $0x20] sm:$0xff] (!%p165_p9)   ;;  %v2138_v6 = vld [vmem:[%s2613_s1 + $0x30] sm:$0xff] (!%p165_p9)   ;;  %vm880_vm2 = vcmask (!%p165_p9), 64512  }
   0xf   : > { %1933 = vmatpush3.bf16.msra.mxu0 (!%p165_p9), %v2133_v0  ;;  %1936 = vmatprep.mubr.msk.bf16.mxu0 (!%p165_p9), %vm2238_vm0, %v2237_v1  ;;  %v2139_v8 = vld [vmem:[%s2613_s1 + $0x28] sm:$0xff] (!%p165_p9)   ;;  %v2140_v9 = vld [vmem:[%s2613_s1 + $0x38] sm:$0xff] (!%p165_p9)   ;;  %v2141_v10 = vld [vmem:[%s2613_s1 + $0x40] sm:$0xff] (!%p165_p9)   ;;  %vm1538_vm4 = vcmask (!%p165_p9), 1043456   ;;  %s186_s13 = sand.u32 (!%p165_p9), 1, %s2227_s16   ;;  %vm1735_vm5 = vcmask (!%p165_p9), 257024  }
  0x10   : > { %1941 = vmatpush3.bf16.msra.mxu1 (!%p165_p9), %v2134_v2  ;;  %1934 = vmatprep.subr.bf16.mxu0 (!%p165_p9), %v2237_v1  ;;  %v2142_v11 = vld [vmem:[%s2613_s1 + $0x50] sm:$0xff] (!%p165_p9)   ;;  %v2143_v12 = vld [vmem:[%s2613_s1 + $0x48] sm:$0xff] (!%p165_p9)   ;;  %v2144_v13 = vld [vmem:[%s2613_s1 + $0x58] sm:$0xff] (!%p165_p9)   ;;  %s1814_s14 = sshll.u32 (!%p165_p9), %s186_s13, 2  ;;  %s1738_s30 = scalar_lea.sflag (!%p165_p9), [#allocation3], %s186_s13 }
  0x11   : > { %1942 = vmatprep.subr.bf16.mxu1 (!%p165_p9), %v2237_v1  ;;  %1944 = vmatprep.mubr.msk.bf16.mxu1 (!%p165_p9), %vm2238_vm0, %v2237_v1  ;;  %v2145_v14 = vld [vmem:[%s2613_s1 + $0x60] sm:$0xff] (!%p165_p9)   ;;  %v2146_v15 = vld [vmem:[%s2613_s1 + $0x70] sm:$0xff] (!%p165_p9)   ;;  %v2147_v16 = vld [vmem:[%s2613_s1 + $0x68] sm:$0xff] (!%p165_p9)   ;;  %s188_s22 = scalar_lea.vmem (!%p165_p9), [#allocation2], %s1814_s14 }
  0x12   : > { %v2148_v17 = vld [vmem:[%s2613_s1 + $0x78] sm:$0xff] (!%p165_p9)   ;;  %v2149_v18 = vld [vmem:[%s2613_s1 + $0x80] sm:$0xff] (!%p165_p9)   ;;  %v2150_v19 = vld [vmem:[%s2613_s1 + $0x90] sm:$0xff] (!%p165_p9)   ;;  %s1751_s23 = sshll.u32 (!%p165_p9), %s188_s22, 4  ;;  %s2572_s23 = int_to_ptr.vmem [resolvable:$true] %s1751_s23 }
  0x13   : > { %1935 = vmatpush3.bf16.msra.mxu0 (!%p165_p9), %v2135_v3  ;;  %v2151_v20 = vld [vmem:[%s2613_s1 + $0x88] sm:$0xff] (!%p165_p9)   ;;  %v2152_v21 = vld [vmem:[%s2613_s1 + $0x98] sm:$0xff] (!%p165_p9)   ;;  %v2153_v22 = vld [vmem:[%s2613_s1 + $0xa0] sm:$0xff] (!%p165_p9)   ;;  %s2173_s5 = scalar_lea.vmem (!%p165_p9), %s2572_s23, 64 }
  0x14   : > { %1943 = vmatpush3.bf16.msra.mxu1 (!%p165_p9), %v2136_v4  ;;  %1948 = vmatprep.subr.bf16.mxu0 (!%p165_p9), %v2237_v1  ;;  %v2154_v23 = vld [vmem:[%s2613_s1 + $0xb0] sm:$0xff] (!%p165_p9)   ;;  %v2155_v24 = vld [vmem:[%s2613_s1 + $0xa8] sm:$0xff] (!%p165_p9)   ;;  %v2156_v25 = vld [vmem:[%s2613_s1 + $0xb8] sm:$0xff] (!%p165_p9)   ;;  %p2174_p11 = scmp.ne.s32.totalorder (!%p165_p9), %s2572_s23, %s2173_s5 }
  0x15   : > { %s190_s9 = scalar_select %p189_p10, %s2286_s19, 1  ;;  %1956 = vmatprep.subr.bf16.mxu1 %v2237_v1 }
  0x16   : > { %p2175_p12 = pnand %p2174_p11, %p2303_p5 }
  0x17   : > { %s1815_s10 = sshll.u32 %s190_s9, 2 }
  0x18   : > { %s192_s20 = scalar_lea.vmem %s2612_s0, %s1815_s10  ;;  %p2176_p13 = pneg %p2175_p12 }
  0x19   : > { %v2345_v7 = vld [vmem:[%s192_s20] sm:$0xf]  ;;  %s1869_s20 = sshll.u32 %s2286_s19, 6  ;;  %s2239_s19 = smov [#allocation2]  }
  0x1a   : > { %1937 = vmatmul.mubr.msk.bf16.vlgmr.msra.gmra.mrb[0].mxu0 %vm255_vm1, %v2345_v7  ;;  %1945 = vmatmul.mubr.msk.bf16.vlgmr.msra.gmra.mrb[0].mxu1 %vm255_vm1, %v2345_v7  ;;  %s2570_s29 = scalar_lea.hbm %s2616_s4, %s1869_s20  ;;  %s2177_s6 = sshll.u32 %s2239_s19, 4  ;;  %s2178_s6 = int_to_ptr.vmem [resolvable:$false] %s2177_s6 }
  0x1b   : > { %1949 = vmatpush3.bf16.msra.mxu0 %v2137_v5  ;;  %1957 = vmatpush3.bf16.msra.mxu1 %v2138_v6  ;;  %s2179_s7 = scalar_lea.vmem %s2178_s6, 128  ;;  %p2180_p0 = scmp.lt.s32.totalorder %s2572_s23, %s2178_s6 }
  0x1c   : > { %1950 = vmatprep.subr.bf16.mxu0 %v2237_v1  ;;  %1958 = vmatprep.subr.bf16.mxu1 %v2237_v1  ;;  %p2181_p1 = scmp.lt.s32.totalorder %s2179_s7, %s2173_s5 }
  0x1d   : > { %1952 = vmatprep.mubr.msk.bf16.mxu0 %vm2238_vm0, %v2237_v1  ;;  %1960 = vmatprep.mubr.msk.bf16.mxu1 %vm2238_vm0, %v2237_v1 }
  0x1e   : > { %p2182_p2 = por %p2181_p1, %p2180_p0 }
  0x1f   : > { %1951 = vmatpush3.bf16.msra.mxu0 %v2139_v8  ;;  %1959 = vmatpush3.bf16.msra.mxu1 %v2140_v9 }
  0x20   : > { %1964 = vmatprep.subr.bf16.mxu0 %v2237_v1  ;;  %1972 = vmatprep.subr.bf16.mxu1 %v2237_v1  ;;  %p2183_p3 = pnand %p2182_p2, %p2176_p13 }
  0x22   : > { %1953 = vmatmul.mubr.msk.bf16.vlgmr.msra.gmra.mrb[4].mxu0 %vm255_vm1, %v2345_v7  ;;  %1961 = vmatmul.mubr.msk.bf16.vlgmr.msra.gmra.mrb[4].mxu1 %vm255_vm1, %v2345_v7 }
  0x23   : > { %1965 = vmatpush3.bf16.msra.mxu0 %v2141_v10  ;;  %1973 = vmatpush3.bf16.msra.mxu1 %v2142_v11 }
  0x24   : > { %1966 = vmatprep.subr.bf16.mxu0 %v2237_v1  ;;  %1974 = vmatprep.subr.bf16.mxu1 %v2237_v1 }
  0x25   : > { %1968 = vmatprep.mubr.msk.bf16.mxu0 %vm2238_vm0, %v2237_v1  ;;  %1976 = vmatprep.mubr.msk.bf16.mxu1 %vm2238_vm0, %v2237_v1 }
  0x27   : > { %1967 = vmatpush3.bf16.msra.mxu0 %v2143_v12  ;;  %1975 = vmatpush3.bf16.msra.mxu1 %v2144_v13 }
  0x28   : > { %1980 = vmatprep.subr.bf16.mxu0 %v2237_v1  ;;  %1988 = vmatprep.subr.bf16.mxu1 %v2237_v1 }
  0x2a   : > { %1969 = vmatmul.mubr.msk.bf16.vlgmr.msra.gmra.mrb[8].mxu0 %vm255_vm1, %v2345_v7  ;;  %1977 = vmatmul.mubr.msk.bf16.vlgmr.msra.gmra.mrb[8].mxu1 %vm255_vm1, %v2345_v7 }
  0x2b   : > { %1981 = vmatpush3.bf16.msra.mxu0 %v2145_v14  ;;  %1989 = vmatpush3.bf16.msra.mxu1 %v2146_v15  ;;  %v875_v15 = vlaneseq }
  0x2c   : > { %1982 = vmatprep.subr.bf16.mxu0 %v2237_v1  ;;  %1990 = vmatprep.subr.bf16.mxu1 %v2237_v1 }
  0x2d   : > { %1984 = vmatprep.mubr.msk.bf16.mxu0 %vm2238_vm0, %v2237_v1  ;;  %1992 = vmatprep.mubr.msk.bf16.mxu1 %vm2238_vm0, %v2237_v1 }
  0x2f   : > { %1983 = vmatpush3.bf16.msra.mxu0 %v2147_v16  ;;  %1991 = vmatpush3.bf16.msra.mxu1 %v2148_v17  ;;  %v2496_v16 = vshrl.u32 %v875_v15, 7  ;;  %v878_v17 = vand.u32 127, %v875_v15 }
  0x30   : > { %1996 = vmatprep.subr.bf16.mxu0 %v2237_v1  ;;  %2004 = vmatprep.subr.bf16.mxu1 %v2237_v1 }
  0x31   : > { %vm879_vm3 = vcmp.le.s32.totalorder %v878_v17, %v2496_v16 }
  0x32   : > { %1985 = vmatmul.mubr.msk.bf16.vlgmr.msra.gmra.mrb[12].mxu0 %vm255_vm1, %v2345_v7  ;;  %1993 = vmatmul.mubr.msk.bf16.vlgmr.msra.gmra.mrb[12].mxu1 %vm255_vm1, %v2345_v7 }
  0x33   : > { %1997 = vmatpush3.bf16.msra.mxu0 %v2149_v18  ;;  %2005 = vmatpush3.bf16.msra.mxu1 %v2150_v19 }
  0x34   : > { %1998 = vmatprep.subr.bf16.mxu0 %v2237_v1  ;;  %2006 = vmatprep.subr.bf16.mxu1 %v2237_v1 }
  0x35   : > { %2000 = vmatprep.mubr.msk.bf16.mxu0 %vm2238_vm0, %v2237_v1  ;;  %2008 = vmatprep.mubr.msk.bf16.mxu1 %vm2238_vm0, %v2237_v1 }
  0x37   : > { %1999 = vmatpush3.bf16.msra.mxu0 %v2151_v20  ;;  %2007 = vmatpush3.bf16.msra.mxu1 %v2152_v21 }
  0x38   : > { %2012 = vmatprep.subr.bf16.mxu0 %v2237_v1  ;;  %2020 = vmatprep.subr.bf16.mxu1 %v2237_v1 }
  0x3a   : > { %2001 = vmatmul.mubr.msk.bf16.vlgmr.msra.gmra.mrb[16].mxu0 %vm255_vm1, %v2345_v7  ;;  %2009 = vmatmul.mubr.msk.bf16.vlgmr.msra.gmra.mrb[16].mxu1 %vm255_vm1, %v2345_v7 }
  0x3b   : > { %2016 = vmatprep.mubr.msk.bf16.mxu0 %vm2238_vm0, %v2237_v1  ;;  %2013 = vmatpush3.bf16.msra.mxu0 %v2153_v22 }
  0x3c   : > { %2014 = vmatprep.subr.bf16.mxu0 %v2237_v1  ;;  %2021 = vmatpush3.bf16.msra.mxu1 %v2154_v23 }
  0x3d   : > { %2024 = vmatprep.mubr.msk.bf16.mxu1 %vm2238_vm0, %v2237_v1  ;;  %2022 = vmatprep.subr.bf16.mxu1 %v2237_v1 }
  0x3f   : > { %2015 = vmatpush3.bf16.msra.mxu0 %v2155_v24 }
  0x40   : > { %2028 = vmatprep.subr.mxu0 %v2237_v1  ;;  %2023 = vmatpush3.bf16.msra.mxu1 %v2156_v25 }
  0x41   : > { %2033 = vmatprep.subr.mxu1 %v2237_v1 }
  0x42   : > { %2017 = vmatmul.mubr.msk.bf16.vlgmr.msra.gmra.mrb[20].mxu0 %vm255_vm1, %v2345_v7 }
  0x43   : > { %2030 = vmatprep.mubr.msk.f32.mxu0 %vm2238_vm0, %v2237_v1  ;;  %2025 = vmatmul.mubr.msk.bf16.vlgmr.msra.gmra.mrb[20].mxu1 %vm255_vm1, %v2345_v7 }
  0x44   : > { %2035 = vmatprep.mubr.msk.f32.mxu1 %vm2238_vm0, %v2237_v1 }
  0xed   : > { %v293_v26 = vpop.f32.mrb[0].mxu0  ;;  %v345_v28 = vpop.f32.mrb[0].mxu1 }
  0xee   : > { %v1938_v27 = vpop.f32.mrb[1].mxu0  ;;  %v1946_v30 = vpop.f32.mrb[1].mxu1  ;;  %v871_v45 = vmul.f32 0.17677669, %v293_v26  ;;  %v872_v48 = vmul.f32 0.17677669, %v345_v28 }
  0xef   : > { %v296_v29 = vpop.f32.mrb[2].mxu0  ;;  %v348_v32 = vpop.f32.mrb[2].mxu1 }
  0xf0   : > { %v1939_v31 = vpop.f32.mrb[3].mxu0  ;;  %v1947_v33 = vpop.f32.mrb[3].mxu1 }
  0xf5   : > { %v397_v34 = vpop.f32.mrb[4].mxu0  ;;  %v449_v36 = vpop.f32.mrb[4].mxu1 }
  0xf6   : > { %v1954_v35 = vpop.f32.mrb[5].mxu0  ;;  %v1962_v38 = vpop.f32.mrb[5].mxu1  ;;  %v873_v55 = vmul.f32 0.17677669, %v397_v34  ;;  %v874_v58 = vmul.f32 0.17677669, %v449_v36 }
  0xf7   : > { %v400_v37 = vpop.f32.mrb[6].mxu0  ;;  %v452_v40 = vpop.f32.mrb[6].mxu1 }
  0xf8   : > { %v1955_v39 = vpop.f32.mrb[7].mxu0  ;;  %v1963_v41 = vpop.f32.mrb[7].mxu1 }
  0xfd   : > { %v501_v42 = vpop.f32.mrb[8].mxu0  ;;  %v553_v43 = vpop.f32.mrb[8].mxu1 }
  0xfe   : > { %v1970_v44 = vpop.f32.mrb[9].mxu0  ;;  %2029 = vmatpush3.xpose.msk.msra.mxu0 %vm880_vm2, %v501_v42  ;;  %2034 = vmatpush3.xpose.msk.msra.mxu1 %vm880_vm2, %v553_v43  ;;  %v1978_v47 = vpop.f32.mrb[9].mxu1 }
  0xff   : > { %v504_v46 = vpop.f32.mrb[10].mxu0  ;;  %2038 = vmatprep.subr.mxu0 %v2237_v1  ;;  %v556_v50 = vpop.f32.mrb[10].mxu1  ;;  %2043 = vmatprep.subr.mxu1 %v2237_v1 }
 0x100   : > { %v1971_v49 = vpop.f32.mrb[11].mxu0  ;;  %v1979_v51 = vpop.f32.mrb[11].mxu1 }
 0x101   : > { %2031 = vmatmul.mubr.msk.f32.vlgmr.msra.gmra.mrb[24].mxu0 %vm880_vm2, %v871_v45  ;;  %2036 = vmatmul.mubr.msk.f32.vlgmr.msra.gmra.mrb[24].mxu1 %vm880_vm2, %v872_v48 }
 0x102   : > { %2040 = vmatprep.mubr.msk.f32.mxu0 %vm2238_vm0, %v2237_v1  ;;  %2045 = vmatprep.mubr.msk.f32.mxu1 %vm2238_vm0, %v2237_v1 }
 0x105   : > { %v605_v52 = vpop.f32.mrb[12].mxu0  ;;  %v657_v53 = vpop.f32.mrb[12].mxu1 }
 0x106   : > { %2039 = vmatpush3.xpose.msk.msra.mxu0 %vm880_vm2, %v605_v52  ;;  %v1986_v54 = vpop.f32.mrb[13].mxu0  ;;  %2044 = vmatpush3.xpose.msk.msra.mxu1 %vm880_vm2, %v657_v53  ;;  %v1994_v57 = vpop.f32.mrb[13].mxu1 }
 0x107   : > { %v608_v56 = vpop.f32.mrb[14].mxu0  ;;  %2048 = vmatprep.subr.mxu0 %v2237_v1  ;;  %v660_v60 = vpop.f32.mrb[14].mxu1  ;;  %2053 = vmatprep.subr.mxu1 %v2237_v1 }
 0x108   : > { %v1987_v59 = vpop.f32.mrb[15].mxu0  ;;  %v1995_v61 = vpop.f32.mrb[15].mxu1 }
 0x109   : > { %2041 = vmatmul.mubr.msk.f32.vlgmr.msra.gmra.mrb[26].mxu0 %vm880_vm2, %v873_v55  ;;  %2046 = vmatmul.mubr.msk.f32.vlgmr.msra.gmra.mrb[26].mxu1 %vm880_vm2, %v874_v58 }
 0x10a   : > { %2050 = vmatprep.mubr.msk.f32.mxu0 %vm2238_vm0, %v2237_v1  ;;  %2055 = vmatprep.mubr.msk.f32.mxu1 %vm2238_vm0, %v2237_v1 }
 0x10d   : > { %v709_v62 = vpop.f32.mrb[16].mxu0  ;;  %v761_v3 = vpop.f32.mrb[16].mxu1 }
 0x10e   : > { %v2002_v63 = vpop.f32.mrb[17].mxu0  ;;  %2049 = vmatpush3.msra.mxu0 %v709_v62  ;;  %v2010_v4 = vpop.f32.mrb[17].mxu1  ;;  %2054 = vmatpush3.msra.mxu1 %v761_v3  ;;  %v1531_v3 = vld [vmem:[%s2614_s2] sm:$0xf] }
 0x10f   : > { %v712_v0 = vpop.f32.mrb[18].mxu0  ;;  %2058 = vmatprep.subr.mxu0 %v2237_v1  ;;  %v764_v5 = vpop.f32.mrb[18].mxu1  ;;  %2063 = vmatprep.subr.mxu1 %v2237_v1  ;;  %v1540_v4 = vsel %vm1538_vm4, %v1531_v3, 0 }
 0x110   : > { %v2003_v2 = vpop.f32.mrb[19].mxu0  ;;  %v2011_v6 = vpop.f32.mrb[19].mxu1  ;;  %v1532_v5 = vld [vmem:[%s2614_s2 + $0x4] sm:$0xf] }
 0x111   : > { %v1586_v6 = vsel %vm1538_vm4, %v1532_v5, 0 }
 0x115   : > { %v2492_v7 = vpop.f32.mrb[20].mxu0 }
 0x116   : > { %v2018_v8 = vpop.f32.mrb[21].mxu0  ;;  %v2494_v10 = vpop.f32.mrb[20].mxu1 }
 0x117   : > { %v816_v9 = vpop.f32.mrb[22].mxu0  ;;  %v2026_v12 = vpop.f32.mrb[21].mxu1 }
 0x118   : > { %v2019_v11 = vpop.f32.mrb[23].mxu0  ;;  %v868_v13 = vpop.f32.mrb[22].mxu1  ;;  %v1534_v12 = vld [vmem:[%s2614_s2 + $0xc] sm:$0xf] }
 0x119   : > { %v2027_v14 = vpop.f32.mrb[23].mxu1  ;;  %v1678_v17 = vsel %vm1538_vm4, %v1534_v12, 0 }
 0x1d4   : > { %v953_v18 = vpop.f32.mrb[24].mxu0  ;;  %v1029_v20 = vpop.f32.mrb[24].mxu1 }
 0x1d5   : > { %v1187_v19 = vsel %vm879_vm3, %v953_v18, -1e+30  ;;  %v2032_v21 = vpop.f32.mrb[25].mxu0  ;;  %v2037_v22 = vpop.f32.mrb[25].mxu1  ;;  %v1188_v24 = vsel %vm879_vm3, %v1029_v20, -1e+30 }
 0x1d6   : > { %v1191_v23 = vsel %vm880_vm2, %v1187_v19, -inf  ;;  %v1194_v25 = vsel %vm880_vm2, %v1188_v24, -inf }
 0x1d7   : > { %1192 = vmax.xlane.f32.xlu0 %v1191_v23 }
 0x1db   : > { %1195 = vmax.xlane.f32.xlu0 %v1194_v25 }
 0x1dc   : > { %v1105_v26 = vpop.f32.mrb[26].mxu0  ;;  %v1181_v28 = vpop.f32.mrb[26].mxu1 }
 0x1dd   : > { %v1189_v27 = vsel %vm879_vm3, %v1105_v26, -1e+30  ;;  %v2042_v29 = vpop.f32.mrb[27].mxu0  ;;  %v2047_v30 = vpop.f32.mrb[27].mxu1  ;;  %v1190_v32 = vsel %vm879_vm3, %v1181_v28, -1e+30 }
 0x1de   : > { %v1197_v31 = vsel %vm880_vm2, %v1189_v27, -inf  ;;  %v1200_v33 = vsel %vm880_vm2, %v1190_v32, -inf }
 0x1df   : > { %1198 = vmax.xlane.f32.xlu1 %v1197_v31  ;;  %v1727_v31 = vld [vmem:[%s2615_s3] sm:$0x1] }
 0x1e3   : > { %1201 = vmax.xlane.f32.xlu1 %v1200_v33 }
 0x264   : > { %v1193_v34 = vpop.xlane.xlu0 %1192 }
 0x265   : > { %v1203_v35 = vsub.f32 %v1187_v19, %v1193_v34 }
 0x267   : > { %v1207_v36 = vmul.f32 1.442695, %v1203_v35 }
 0x268   : > { %v1196_v37 = vpop.xlane.xlu0 %1195 }
 0x269   : > { %2157 = vpow2.f32 %v1207_v36  ;;  %v1204_v38 = vsub.f32 %v1188_v24, %v1196_v37  ;;  %v1728_v36 = vunpack.c.l.bf16 %v1727_v31  ;;  %v1731_v37 = vsub.s32 0, %v2496_v16 }
 0x26b   : > { %v1209_v39 = vmul.f32 1.442695, %v1204_v38 }
 0x26c   : > { %v1199_v40 = vpop.xlane.xlu1 %1198 }
 0x26d   : > { %2159 = vpow2.f32 %v1209_v39  ;;  %v1205_v41 = vsub.f32 %v1189_v27, %v1199_v40 }
 0x26f   : > { %v1211_v42 = vmul.f32 1.442695, %v1205_v41 }
 0x270   : > { %v1202_v43 = vpop.xlane.xlu1 %1201 }
 0x271   : > { %2161 = vpow2.f32 %v1211_v42  ;;  %v1206_v44 = vsub.f32 %v1190_v32, %v1202_v43 }
 0x273   : > { %v2158_v45 = vpop.eup %2157  ;;  %v1213_v46 = vmul.f32 1.442695, %v1206_v44  ;;  %v1732_v44 = vrot.slane %v1728_v36, %v1731_v37 }
 0x274   : > { %v1215_v47 = vsel %vm880_vm2, %v2158_v45, 0.0 }
 0x275   : > { %2163 = vpow2.f32 %v1213_v46  ;;  %1216 = vadd.xlane.f32.xlu0 %v1215_v47 }
 0x277   : > { %v2160_v48 = vpop.eup %2159 }
 0x278   : > { %v1218_v49 = vsel %vm880_vm2, %v2160_v48, 0.0 }
 0x279   : > { %1219 = vadd.xlane.f32.xlu1 %v1218_v49 }
 0x27b   : > { %v2162_v50 = vpop.eup %2161 }
 0x27c   : > { %v1221_v51 = vsel %vm880_vm2, %v2162_v50, 0.0 }
 0x27d   : > { %1222 = vadd.xlane.f32.xlu0 %v1221_v51 }
 0x27f   : > { %v2164_v52 = vpop.eup %2163 }
 0x280   : > { %v1224_v53 = vsel %vm880_vm2, %v2164_v52, 0.0 }
 0x281   : > { %1225 = vadd.xlane.f32.xlu1 %v1224_v53 }
 0x302   : > { %v1217_v54 = vpop.xlane.xlu0 %1216 }
 0x303   : > { %2165 = vrcp.f32 %v1217_v54 }
 0x306   : > { %v1220_v55 = vpop.xlane.xlu1 %1219 }
 0x307   : > { %2167 = vrcp.f32 %v1220_v55 }
 0x30a   : > { %v1223_v56 = vpop.xlane.xlu0 %1222 }
 0x30b   : > { %2169 = vrcp.f32 %v1223_v56 }
 0x30d   : > { %v2166_v57 = vpop.eup %2165 }
 0x30e   : > { %v1231_v58 = vmul.f32 %v2166_v57, %v2158_v45  ;;  %v1226_v59 = vpop.xlane.xlu1 %1225 }
 0x30f   : > { %2171 = vrcp.f32 %v1226_v59 }
 0x310   : > { %2051 = vmatmul.mubr.msk.f32.vlgmr.msra.gmra.mrb[28].mxu0 %vm880_vm2, %v1231_v58 }
 0x311   : > { %v2168_v60 = vpop.eup %2167  ;;  %2059 = vmatpush3.msra.mxu0 %v2492_v7  ;;  %2060 = vmatprep.mubr.msk.f32.mxu0 %vm2238_vm0, %v2237_v1  ;;  %v1533_v7 = vld [vmem:[%s2614_s2 + $0x8] sm:$0xf] }
 0x312   : > { %v1232_v61 = vmul.f32 %v2168_v60, %v2160_v48  ;;  %2068 = vmatprep.subr.bf16.mxu0 %v2237_v1  ;;  %v1632_v11 = vsel %vm1538_vm4, %v1533_v7, 0 }
 0x314   : > { %2056 = vmatmul.mubr.msk.f32.vlgmr.msra.gmra.mrb[28].mxu1 %vm880_vm2, %v1232_v61 }
 0x315   : > { %v2170_v62 = vpop.eup %2169  ;;  %2064 = vmatpush3.msra.mxu1 %v2494_v10  ;;  %2065 = vmatprep.mubr.msk.f32.mxu1 %vm2238_vm0, %v2237_v1 }
 0x316   : > { %v1233_v63 = vmul.f32 %v2170_v62, %v2162_v50  ;;  %2074 = vmatprep.subr.bf16.mxu1 %v2237_v1 }
 0x318   : > { %2061 = vmatmul.mubr.msk.f32.vlgmr.msra.gmra.mrb[30].mxu0 %vm880_vm2, %v1233_v63 }
 0x319   : > { %v2172_v0 = vpop.eup %2171  ;;  %2070 = vmatprep.mubr.msk.bf16.mxu0 %vm2238_vm0, %v2237_v1  ;;  %2069 = vmatpush3.bf16.msra.mxu0 %v1540_v4 }
 0x31a   : > { %v1234_v2 = vmul.f32 %v2172_v0, %v2164_v52  ;;  %2080 = vmatprep.subr.bf16.mxu0 %v2237_v1 }
 0x31c   : > { %2066 = vmatmul.mubr.msk.f32.vlgmr.msra.gmra.mrb[30].mxu1 %vm880_vm2, %v1234_v2 }
 0x31d   : > { %2076 = vmatprep.mubr.msk.bf16.mxu1 %vm2238_vm0, %v2237_v1  ;;  %2075 = vmatpush3.bf16.msra.mxu1 %v1586_v6 }
 0x31e   : > { %2086 = vmatprep.subr.bf16.mxu1 %v2237_v1 }
 0x3e3   : > { %v1304_v8 = vpop.f32.mrb[28].mxu0 }
 0x3e4   : > { %v1527_v9 = vpack.c.bf16 %v1304_v8, %v1304_v8  ;;  %v2052_v10 = vpop.f32.mrb[29].mxu0 }
 0x3e6   : > { %2071 = vmatmul.mubr.msk.bf16.vlgmr.msra.gmra.mrb[32].mxu0 %vm880_vm2, %v1527_v9 }
 0x3e7   : > { %v1377_v13 = vpop.f32.mrb[28].mxu1  ;;  %2081 = vmatpush3.bf16.msra.mxu0 %v1632_v11  ;;  %2082 = vmatprep.mubr.msk.bf16.mxu0 %vm2238_vm0, %v2237_v1 }
 0x3e8   : > { %v1528_v14 = vpack.c.bf16 %v1377_v13, %v1377_v13  ;;  %v2057_v15 = vpop.f32.mrb[29].mxu1 }
 0x3ea   : > { %2077 = vmatmul.mubr.msk.bf16.vlgmr.msra.gmra.mrb[32].mxu1 %vm880_vm2, %v1528_v14 }
 0x3eb   : > { %v1450_v18 = vpop.f32.mrb[30].mxu0  ;;  %2087 = vmatpush3.bf16.msra.mxu1 %v1678_v17  ;;  %2088 = vmatprep.mubr.msk.bf16.mxu1 %vm2238_vm0, %v2237_v1 }
 0x3ec   : > { %v1529_v19 = vpack.c.bf16 %v1450_v18, %v1450_v18  ;;  %v2062_v20 = vpop.f32.mrb[31].mxu0 }
 0x3ee   : > { %2083 = vmatmul.mubr.msk.bf16.vlgmr.msra.gmra.mrb[36].mxu0 %vm880_vm2, %v1529_v19 }
 0x3ef   : > { %v1523_v21 = vpop.f32.mrb[30].mxu1 }
 0x3f0   : > { %v1530_v22 = vpack.c.bf16 %v1523_v21, %v1523_v21  ;;  %v2067_v23 = vpop.f32.mrb[31].mxu1 }
 0x3f2   : > { %2089 = vmatmul.mubr.msk.bf16.vlgmr.msra.gmra.mrb[36].mxu1 %vm880_vm2, %v1530_v22 }
 0x4b9   : > { %v1576_v24 = vpop.f32.mrb[32].mxu0 }
 0x4ba   : > { %v2072_v25 = vpop.f32.mrb[33].mxu0  ;;  %v1720_v29 = vsel %vm255_vm1, %v1576_v24, 0.0 }
 0x4bb   : > { %v1579_v26 = vpop.f32.mrb[34].mxu0 }
 0x4bc   : > { %v2073_v27 = vpop.f32.mrb[35].mxu0 }
 0x4bd   : > { %v1622_v28 = vpop.f32.mrb[32].mxu1 }
 0x4be   : > { %v1721_v30 = vsel %vm255_vm1, %v1622_v28, 0.0  ;;  %v2078_v1 = vpop.f32.mrb[33].mxu1 }
 0x4bf   : > { %v1722_v32 = vadd.f32 %v1721_v30, %v1720_v29  ;;  %v1625_v33 = vpop.f32.mrb[34].mxu1 }
 0x4c0   : > { %v2079_v34 = vpop.f32.mrb[35].mxu1 }
 0x4c1   : > { %v1668_v35 = vpop.f32.mrb[36].mxu0 }
 0x4c2   : > { %v1723_v38 = vsel %vm255_vm1, %v1668_v35, 0.0  ;;  %v2084_v39 = vpop.f32.mrb[37].mxu0 }
 0x4c3   : > { %v1724_v40 = vadd.f32 %v1723_v38, %v1722_v32  ;;  %v1671_v41 = vpop.f32.mrb[38].mxu0 }
 0x4c4   : > { %v2085_v42 = vpop.f32.mrb[39].mxu0 }
 0x4c5   : > { %v1714_v43 = vpop.f32.mrb[36].mxu1 }
 0x4c6   : > { %v1725_v45 = vsel %vm255_vm1, %v1714_v43, 0.0  ;;  %v2090_v46 = vpop.f32.mrb[37].mxu1 }
 0x4c7   : > { %v1726_v47 = vadd.f32 %v1725_v45, %v1724_v40  ;;  %v1717_v48 = vpop.f32.mrb[38].mxu1 }
 0x4c8   : > { %v2091_v49 = vpop.f32.mrb[39].mxu1 }
 0x4c9   : > { %v1733_v16 = vadd.f32 %v1732_v44, %v1726_v47 }
 0x4cb   : > { %v1734_v50 = vpack.c.bf16 %v1733_v16, %v1733_v16 }
 0x4cd   : > { %1736 = vst.msk [vmem:[%s188_s22] sm:$0xf] %vm1735_vm5, %v1734_v50 }
 0x4ce   : > { %2186 = shalt.err (!%p2183_p3)
}
 0x4cf   : > { %s2187_s8 = scalar_lea.hbm %s2570_s29, 64  ;;  %s2191_s11 = scalar_lea.hbm %s2616_s4, 128 }
 0x4d0   : > { %p2188_p4 = scmp.ne.s32.totalorder %s2570_s29, %s2187_s8  ;;  %p2192_p9 = scmp.lt.u32.totalorder %s2570_s29, %s2616_s4 }
 0x4d1   : > { %p2193_p10 = scmp.lt.u32.totalorder %s2191_s11, %s2187_s8  ;;  %p2195_p12 = scmp.lt.u32.totalorder %s2187_s8, %s2570_s29 }
 0x4d2   : > { %p2189_p7 = pnand %p2188_p4, %p2303_p5 }
 0x4d3   : > { %p2194_p11 = por %p2193_p10, %p2192_p9 }
 0x4d4   : > { %p2190_p8 = pneg %p2189_p7 }
 0x4d5   : > { %p2196_p13 = por %p2195_p12, %p2194_p11 }
 0x4d7   : > { %p2197_p0 = pnand %p2196_p13, %p2190_p8 }
 0x4d9   : > { %2200 = shalt.err (!%p2197_p0)
}
 0x4da   : > { %2092 = dma.vmem_to_hbm [thread:$0]  (%p2303_p5), %s2572_s23, 64, %s2570_s29, %s1738_s30  }
 0x4db PF: > { %p2098_p1 = scmp.ge.s32.totalorder %s2235_s18, 2  ;;  %s1763_s14 = sand.u32 1, %s2223_s15  }
 0x4dc   : > { %s1764_s20 = scalar_lea.sflag [#allocation3], %s1763_s14 }
 0x4dd   : > { %p2095_p2 = pnand %p2098_p1, %p2307_p6 }
 0x4df   : > { %2218 = dma.done.wait (!%p2095_p2), %s1764_s20, 64  }
 0x4e0   : > { %2220 = vsyncadd (!%p2095_p2), %s1764_s20, 4294967232  ;;  %p14_p3 = scmp.ge.s32.totalorder %s2290_s21, 4   ;;  %s2619_s15 = smov %s2227_s16 }
 0x4e1   : > { %s2620_s16 = smov %s2231_s17  ;;  %s2621_s17 = smov %s2301_s24 }
 0x4e2   : > { %s2622_s18 = smov %s2290_s21  ;;  %16 = sbr.rel (!%p14_p3) target bundleno = 3 (0x3), region = 71 }
 0x4e9   :  { %1769 = vsyncpa [#allocation3], 1 }
 0x4ea   :  { %1771 = vsyncpa [#allocation3 + $0x1], 1 }

</bundles_post_ra>
